<compile_context>
chip_gen: v7x
topology: tpu7x:2x2x1
jax: 0.10.0
libtpu: 0.0.40
codegen_flags: <defaults>
</compile_context>

<pallas_src>
import jax
import jax.numpy as jnp
from jax.experimental import pallas as pl
from jax.experimental.pallas import tpu as pltpu

_LANE = 128     # vreg lane width (last dim)
_SUBLANE = 8    # vreg sublane count (second-to-last dim)


def _round_up(v, m):
    return (v + m - 1) // m * m


def _linear_kernel(x_ref, w_ref, b_ref, o_ref):
    # x: (TM, K), w: (K, N), b: (1, N)  ->  o: (TM, N)
    acc = jnp.dot(x_ref[...], w_ref[...], preferred_element_type=jnp.float32)
    o_ref[...] = (acc + b_ref[...].astype(jnp.float32)).astype(o_ref.dtype)


def simple_regression_head_forward(x, weight, bias, *, row_tile=512):
    """Pallas equivalent of SimpleRegressionHead.forward.

    x:      (B, dim) frozen features
    weight: (num_labels, dim)  -- PyTorch nn.Linear layout
    bias:   (num_labels,)
    returns (B, num_labels) == x @ weight.T + bias
    """
    b, k = x.shape
    n = weight.shape[0]
    assert weight.shape[1] == k and bias.shape == (n,)

    # Tiny parameter prep (constant-folds under jit): (out, in) -> (in, out); bias row.
    w_t = weight.T                  # (k, n)
    b_row = bias.reshape(1, n)      # (1, n)

    # Row tiling:
    #  - tiny batch: one full-extent block (tm = b; legal for any b, no padding).
    #  - larger batch: multiple-of-8 tile, capped at row_tile, and sized so the grid
    #    has >= 2 steps (keeps both v7x TensorCores busy).  The last tile may be
    #    partial; Pallas masks the out-of-bounds rows on writeback.
    if b <= 2 * _SUBLANE:
        tm = b
    else:
        tm = max(_SUBLANE, min(row_tile, _round_up(pl.cdiv(b, 2), _SUBLANE)))
    grid = (pl.cdiv(b, tm),)

    out = pl.pallas_call(
        _linear_kernel,
        out_shape=jax.ShapeDtypeStruct((b, n), x.dtype),
        grid_spec=pltpu.PrefetchScalarGridSpec(
            num_scalar_prefetch=0,
            grid=grid,
            in_specs=[
                # Row tile of features; last dim = full K (no padding needed).
                pl.BlockSpec((tm, k), lambda i: (i, 0)),
                # Whole (k, n) weight; constant block index -> stays resident.
                pl.BlockSpec((k, n), lambda i: (0, 0)),
                # Bias row (1, n); tiny VMEM block (kept general for n = 1 or 2).
                pl.BlockSpec((1, n), lambda i: (0, 0)),
            ],
            out_specs=pl.BlockSpec((tm, n), lambda i: (i, 0)),
        ),
        compiler_params=pltpu.CompilerParams(
            dimension_semantics=("parallel",),   # shards row tiles across TCs on v7x
        ),
    )(x, w_t, b_row)

    return out


if __name__ == "__main__":
    key = jax.random.PRNGKey(0)
    k_x, k_w, k_x2 = jax.random.split(key, 3)

    # Small shapes consistent with the module: batch=2 frozen feature vectors of dim=384.
    batch, dim = 2, 384
    num_labels, aleatoric = 1, False
    if aleatoric:
        num_labels *= 2

    x = jax.random.normal(k_x, (batch, dim), dtype=jnp.float32)
    # Match SimpleRegressionHead init: weight ~ N(0, 0.01), bias = 0.
    weight = 0.01 * jax.random.normal(k_w, (num_labels, dim), dtype=jnp.float32)
    bias = jnp.zeros((num_labels,), jnp.float32)

    fwd = jax.jit(simple_regression_head_forward)

    y = jax.block_until_ready(fwd(x, weight, bias))
    y_ref = x @ weight.T + bias
    assert y.shape == (batch, num_labels) and y.dtype == jnp.float32
    assert jnp.allclose(y, y_ref, atol=1e-5, rtol=1e-5)

    # Also exercise the gridded path with a ragged (partial) last row tile.
    x2 = jax.random.normal(k_x2, (20, dim), dtype=jnp.float32)
    y2 = jax.block_until_ready(fwd(x2, weight, bias))
    assert jnp.allclose(y2, x2 @ weight.T + bias, atol=1e-5, rtol=1e-5)

    print("KERNEL_OK")
</pallas_src>

<mosaic_0001>
module attributes {stable_mosaic.version = 11 : i64} {
  func.func @_linear_kernel(%arg0: i32, %arg1: memref<2x384xf32, #tpu.memory_space<vmem>>, %arg2: memref<384x1xf32, #tpu.memory_space<vmem>>, %arg3: memref<1x1xf32, #tpu.memory_space<vmem>>, %arg4: memref<2x1xf32, #tpu.memory_space<vmem>>) attributes {dimension_semantics = [#tpu.dimension_semantics<parallel>], iteration_bounds = array<i64: 1>, scalar_prefetch = 0 : i64, scratch_operands = 0 : i64, tpu.core_type = #tpu.core_type<tc>, window_params = [{transform_indices = @transform_0, window_bounds = array<i64: 2, 384>}, {pipeline_mode = #tpu.pipeline_mode<synchronous>, transform_indices = @transform_1, window_bounds = array<i64: 384, 1>}, {pipeline_mode = #tpu.pipeline_mode<synchronous>, transform_indices = @transform_2, window_bounds = array<i64: 1, 1>}, {transform_indices = @transform_3, window_bounds = array<i64: 2, 1>}]} {
    %c0 = arith.constant 0 : index
    %c0_0 = arith.constant 0 : index
    %0 = vector.load %arg1[%c0, %c0_0] : memref<2x384xf32, #tpu.memory_space<vmem>>, vector<2x384xf32>
    %c0_1 = arith.constant 0 : index
    %c0_2 = arith.constant 0 : index
    %1 = vector.load %arg2[%c0_1, %c0_2] : memref<384x1xf32, #tpu.memory_space<vmem>>, vector<384x1xf32>
    %cst = arith.constant dense<0.000000e+00> : vector<2x1xf32>
    %2 = tpu.matmul %0, %1, %cst {dimension_numbers = #tpu.dot_dimension_numbers<[1], [0], [0], [1], [0, 0, 1, 1], [], []>} : vector<2x384xf32>, vector<384x1xf32>, vector<2x1xf32> -> vector<2x1xf32>
    %c0_3 = arith.constant 0 : index
    %c0_4 = arith.constant 0 : index
    %3 = vector.load %arg3[%c0_3, %c0_4] : memref<1x1xf32, #tpu.memory_space<vmem>>, vector<1x1xf32>
    %4 = vector.broadcast %3 : vector<1x1xf32> to vector<2x1xf32>
    %5 = arith.addf %2, %4 : vector<2x1xf32>
    %c0_5 = arith.constant 0 : index
    %c0_6 = arith.constant 0 : index
    %6 = vector.load %arg4[%c0_5, %c0_6] : memref<2x1xf32, #tpu.memory_space<vmem>>, vector<2x1xf32>
    tpu.vector_store %arg4[%c0_5, %c0_6], %5 {strides = array<i32>} : memref<2x1xf32, #tpu.memory_space<vmem>>, vector<2x1xf32>,
    return
  }
  func.func @transform_0(%arg0: i32) -> (i32, i32) {
    %c0_i32 = arith.constant 0 : i32
    %c0_i32_0 = arith.constant 0 : i32
    return %arg0, %c0_i32 : i32, i32
  }
  func.func @transform_1(%arg0: i32) -> (i32, i32) {
    %c0_i32 = arith.constant 0 : i32
    %c0_i32_0 = arith.constant 0 : i32
    %c0_i32_1 = arith.constant 0 : i32
    return %c0_i32, %c0_i32_0 : i32, i32
  }
  func.func @transform_2(%arg0: i32) -> (i32, i32) {
    %c0_i32 = arith.constant 0 : i32
    %c0_i32_0 = arith.constant 0 : i32
    %c0_i32_1 = arith.constant 0 : i32
    return %c0_i32, %c0_i32_0 : i32, i32
  }
  func.func @transform_3(%arg0: i32) -> (i32, i32) {
    %c0_i32 = arith.constant 0 : i32
    %c0_i32_0 = arith.constant 0 : i32
    return %arg0, %c0_i32 : i32, i32
  }
}

</mosaic_0001>

<bundles_post_ra>
// kernel: simple_regression_head_forward.1
= control target key start
LH: loop header
LB: loop body
LE: loop exit
PB: predicated region body
PF: predicated region fallthrough
CT: control target
= control target key end

     0   :  { %v387_v3 = vmov 0.0|0.0   ;;  %vm388_vm0 = vmmov 0   ;;  %v389_v8 = vmov 0.0   ;;  %v390_v20 = vmov 1983009808   ;;  %s572_s1 = inlined_call_operand.vmem [shape: f32[384,1], index: 1, kind: input, shape index: {}]   ;;  %s573_s0 = inlined_call_operand.vmem [shape: f32[2,384], index: 0, kind: input, shape index: {}]   ;;  %s574_s2 = inlined_call_operand.<no memory space> [shape: f32[1,1], index: 2, kind: input, shape index: {}]   ;;  %s575_s3 = inlined_call_operand.vmem [shape: f32[2,1], index: 3, kind: output, shape index: {}]  }
   0x1   :  { %v33_v0 = vld [vmem:[%s572_s1 + $0x80] sm:$0xff]  ;;  %v34_v1 = vld [vmem:[%s572_s1 + $0x88] sm:$0xff]  ;;  %358 = vmatprep.subr.bf16.mxu1 %v387_v3  ;;  %v35_v6 = vld [vmem:[%s572_s1 + $0x90] sm:$0xff]  ;;  %323 = vmatprep.mubr.msk.f32.mxu1 %vm388_vm0, %v389_v8  ;;  %v75_v21 = vunpack.c.l.s4 %v390_v20  ;;  %v77_v22 = vlaneseq  ;;  %vm232_vm1 = vcmask 1024  }
   0x2   :  { %v17_v2 = vld [vmem:[%s572_s1] sm:$0xff]  ;;  %v326_v4 = vpack.c.bf16 %v34_v1, %v33_v0  ;;  %v18_v5 = vld [vmem:[%s572_s1 + $0x8] sm:$0xff]  ;;  %v36_v7 = vld [vmem:[%s572_s1 + $0x98] sm:$0xff] }
   0x3   :  { %v328_v9 = vpack.c.bf16 %v18_v5, %v17_v2  ;;  %v330_v10 = vpack.c.bf16 %v36_v7, %v35_v6  ;;  %v19_v11 = vld [vmem:[%s572_s1 + $0x10] sm:$0xff]  ;;  %v20_v12 = vld [vmem:[%s572_s1 + $0x18] sm:$0xff]  ;;  %v49_v13 = vld [vmem:[%s572_s1 + $0x100] sm:$0xff]  ;;  %v76_v33 = vunpack.c.0.s8 %v75_v21  ;;  %v78_v34 = vshrl.u32 %v77_v22, 7 }
   0x4   :  { %327 = vmatprep.subr.bf16.mxu0 %v326_v4  ;;  %v50_v14 = vld [vmem:[%s572_s1 + $0x108] sm:$0xff]  ;;  %v37_v15 = vld [vmem:[%s572_s1 + $0xa0] sm:$0xff]  ;;  %v332_v17 = vpack.c.bf16 %v20_v12, %v19_v11  ;;  %v51_v19 = vld [vmem:[%s572_s1 + $0x110] sm:$0xff]  ;;  %v8_v22 = vstv %s574_s2 }
   0x5   :  { %v38_v16 = vld [vmem:[%s572_s1 + $0xa8] sm:$0xff]  ;;  %329 = vmatpush3.bf16.msra.mxu0 %v328_v9  ;;  %v359_v18 = vpack.c.bf16 %v50_v14, %v49_v13  ;;  %v21_v24 = vld [vmem:[%s572_s1 + $0x20] sm:$0xff]  ;;  %v52_v26 = vld [vmem:[%s572_s1 + $0x118] sm:$0xff]  ;;  %v79_v44 = vsub.s32 %v76_v33, %v78_v34  ;;  %9 = vst [vmem:[#allocation2] sm:$0x1] %v8_v22 }
   0x6   :  { %331 = vmatprep.subr.bf16.mxu0 %v330_v10  ;;  %v334_v23 = vpack.c.bf16 %v38_v16, %v37_v15  ;;  %v22_v25 = vld [vmem:[%s572_s1 + $0x28] sm:$0xff]  ;;  %v362_v27 = vpack.c.bf16 %v52_v26, %v51_v19  ;;  %v39_v28 = vld [vmem:[%s572_s1 + $0xb0] sm:$0xff]  ;;  %v40_v29 = vld [vmem:[%s572_s1 + $0xb8] sm:$0xff] }
   0x7   :  { %360 = vmatpush3.bf16.msra.mxu1 %v359_v18  ;;  %v53_v30 = vld [vmem:[%s572_s1 + $0x120] sm:$0xff]  ;;  %v54_v31 = vld [vmem:[%s572_s1 + $0x128] sm:$0xff]  ;;  %v336_v32 = vpack.c.bf16 %v22_v25, %v21_v24  ;;  %v338_v35 = vpack.c.bf16 %v40_v29, %v39_v28  ;;  %v23_v36 = vld [vmem:[%s572_s1 + $0x30] sm:$0xff] }
   0x8   :  { %361 = vmatprep.subr.bf16.mxu1 %v387_v3  ;;  %v24_v37 = vld [vmem:[%s572_s1 + $0x38] sm:$0xff]  ;;  %v365_v38 = vpack.c.bf16 %v54_v31, %v53_v30  ;;  %v41_v39 = vld [vmem:[%s572_s1 + $0xc0] sm:$0xff]  ;;  %v42_v40 = vld [vmem:[%s572_s1 + $0xc8] sm:$0xff] }
   0x9   :  { %333 = vmatpush3.bf16.msra.mxu0 %v332_v17  ;;  %v55_v41 = vld [vmem:[%s572_s1 + $0x130] sm:$0xff]  ;;  %v56_v42 = vld [vmem:[%s572_s1 + $0x138] sm:$0xff]  ;;  %v340_v43 = vpack.c.bf16 %v24_v37, %v23_v36  ;;  %v342_v45 = vpack.c.bf16 %v42_v40, %v41_v39  ;;  %v25_v46 = vld [vmem:[%s572_s1 + $0x40] sm:$0xff] }
   0xa   :  { %335 = vmatprep.subr.bf16.mxu0 %v334_v23  ;;  %v26_v47 = vld [vmem:[%s572_s1 + $0x48] sm:$0xff]  ;;  %v368_v48 = vpack.c.bf16 %v56_v42, %v55_v41  ;;  %v43_v49 = vld [vmem:[%s572_s1 + $0xd0] sm:$0xff]  ;;  %v44_v50 = vld [vmem:[%s572_s1 + $0xd8] sm:$0xff] }
   0xb   :  { %363 = vmatpush3.bf16.msra.mxu1 %v362_v27  ;;  %v57_v51 = vld [vmem:[%s572_s1 + $0x140] sm:$0xff]  ;;  %v58_v52 = vld [vmem:[%s572_s1 + $0x148] sm:$0xff]  ;;  %v344_v54 = vpack.c.bf16 %v26_v47, %v25_v46  ;;  %v346_v56 = vpack.c.bf16 %v44_v50, %v43_v49  ;;  %v27_v57 = vld [vmem:[%s572_s1 + $0x50] sm:$0xff] }
   0xc   :  { %364 = vmatprep.subr.bf16.mxu1 %v387_v3  ;;  %v16_v53 = vld [vmem:[%s573_s0] sm:$0x3f]  ;;  %v28_v58 = vld [vmem:[%s572_s1 + $0x58] sm:$0xff]  ;;  %v371_v59 = vpack.c.bf16 %v58_v52, %v57_v51  ;;  %v46_v61 = vld [vmem:[%s572_s1 + $0xe8] sm:$0xff] }
   0xd   :  { %337 = vmatpush3.bf16.msra.mxu0 %v336_v32  ;;  %v80_v55 = vrot.slane %v16_v53, %v79_v44  ;;  %v45_v60 = vld [vmem:[%s572_s1 + $0xe0] sm:$0xff]  ;;  %v59_v63 = vld [vmem:[%s572_s1 + $0x150] sm:$0xff]  ;;  %v60_v0 = vld [vmem:[%s572_s1 + $0x158] sm:$0xff]  ;;  %v348_v1 = vpack.c.bf16 %v28_v58, %v27_v57  ;;  %v73_v19 = vcombine.high %v16_v53, %v16_v53 }
   0xe   :  { %339 = vmatprep.subr.bf16.mxu0 %v338_v35  ;;  %v350_v2 = vpack.c.bf16 %v46_v61, %v45_v60  ;;  %v29_v4 = vld [vmem:[%s572_s1 + $0x60] sm:$0xff]  ;;  %v30_v5 = vld [vmem:[%s572_s1 + $0x68] sm:$0xff]  ;;  %v374_v6 = vpack.c.bf16 %v60_v0, %v59_v63  ;;  %v47_v7 = vld [vmem:[%s572_s1 + $0xf0] sm:$0xff] }
   0xf   :  { %366 = vmatpush3.bf16.msra.mxu1 %v365_v38  ;;  %v88_v62 = vcombine.high %v80_v55, %v80_v55  ;;  %v48_v8 = vld [vmem:[%s572_s1 + $0xf8] sm:$0xff]  ;;  %v61_v9 = vld [vmem:[%s572_s1 + $0x160] sm:$0xff]  ;;  %v62_v10 = vld [vmem:[%s572_s1 + $0x168] sm:$0xff]  ;;  %v352_v11 = vpack.c.bf16 %v30_v5, %v29_v4  ;;  %v87_v21 = vrot.slane %v73_v19, %v79_v44 }
  0x10   :  { %367 = vmatprep.subr.bf16.mxu1 %v387_v3  ;;  %v354_v12 = vpack.c.bf16 %v48_v8, %v47_v7  ;;  %v31_v13 = vld [vmem:[%s572_s1 + $0x70] sm:$0xff]  ;;  %v32_v14 = vld [vmem:[%s572_s1 + $0x78] sm:$0xff]  ;;  %v377_v15 = vpack.c.bf16 %v62_v10, %v61_v9  ;;  %v238_v25 = vld [vmem:[#allocation2] ss:$0 sm:$0xff] }
  0x11   :  { %341 = vmatpush3.bf16.msra.mxu0 %v340_v43  ;;  %156 = vmatprep.mubr.f32.mxu0 %v88_v62  ;;  %v63_v16 = vld [vmem:[%s572_s1 + $0x170] sm:$0xff]  ;;  %v64_v17 = vld [vmem:[%s572_s1 + $0x178] sm:$0xff]  ;;  %v356_v18 = vpack.c.bf16 %v32_v14, %v31_v13 }
  0x12   :  { %343 = vmatprep.subr.bf16.mxu0 %v342_v45  ;;  %v380_v20 = vpack.c.bf16 %v64_v17, %v63_v16 }
  0x13   :  { %369 = vmatpush3.bf16.msra.mxu1 %v368_v48 }
  0x14   :  { %370 = vmatprep.subr.bf16.mxu1 %v387_v3 }
  0x15   :  { %345 = vmatpush3.bf16.msra.mxu0 %v344_v54 }
  0x16   :  { %347 = vmatprep.subr.bf16.mxu0 %v346_v56 }
  0x17   :  { %372 = vmatpush3.bf16.msra.mxu1 %v371_v59 }
  0x18   :  { %373 = vmatprep.subr.bf16.mxu1 %v387_v3 }
  0x19   :  { %349 = vmatpush3.bf16.msra.mxu0 %v348_v1 }
  0x1a   :  { %351 = vmatprep.subr.bf16.mxu0 %v350_v2 }
  0x1b   :  { %375 = vmatpush3.bf16.msra.mxu1 %v374_v6 }
  0x1c   :  { %376 = vmatprep.subr.bf16.mxu1 %v387_v3 }
  0x1d   :  { %353 = vmatpush3.bf16.msra.mxu0 %v352_v11 }
  0x1e   :  { %355 = vmatprep.subr.bf16.mxu0 %v354_v12 }
  0x1f   :  { %378 = vmatpush3.bf16.msra.mxu1 %v377_v15 }
  0x20   :  { %379 = vmatprep.subr.bf16.mxu1 %v387_v3 }
  0x21   :  { %357 = vmatpush3.bf16.msra.mxu0 %v356_v18 }
  0x23   :  { %381 = vmatpush3.bf16.msra.mxu1 %v380_v20 }
  0x24   :  { %157 = vmatmul.mubr.f32.vlgmr.msra.gmra.mrb[0].mxu0 %v80_v55 }
  0x26   :  { %324 = vmatmul.mubr.f32.vlgmr.msra.gmra.mrb[0].mxu1 %v87_v21 }
  0xf7   :  { %v271_v23 = vpop.f32.mrb[0].mxu0 }
  0xf8   :  { %v272_v24 = vpop.f32.mrb[1].mxu0 }
  0xf9   :  { %v273_v26 = vadd.f32 %v272_v24, %v271_v23  ;;  %v228_v27 = vpop.f32.mrb[0].mxu1 }
  0xfa   :  { %v325_v28 = vpop.f32.mrb[1].mxu1 }
  0xfb   :  { %v159_v29 = vadd.f32 %v273_v26, %v238_v25 }
  0xfd   :  { %v229_v30 = vadd.f32 %v228_v27, %v159_v29 }
  0xff   :  { %233 = vst.msk [vmem:[%s575_s3] sm:$0x3] %vm232_vm1, %v229_v30 }

</bundles_post_ra>
